<compile_context>
chip_gen: v7x
topology: tpu7x:2x2x1
jax: 0.10.0
libtpu: 0.0.40
codegen_flags: <defaults>
</compile_context>

<pallas_src>
import jax
import jax.numpy as jnp
from jax.experimental import pallas as pl
from jax.experimental.pallas import tpu as pltpu


# ---------------------------------------------------------------------------
# Kernels
# ---------------------------------------------------------------------------
def _kernel_full_k(x_ref, w_ref, add_ref, o_ref):
    # x_ref:   (1, T, K)   bf16  patchified activations for (token-tile, batch);
    #                            token row 0 of the first tile is all-zero
    #                            (stand-in for the cls token).
    # w_ref:   (K, Dp)     bf16  conv weight, resident across the whole grid.
    # add_ref: (T, Dp)     f32   row 0 (first tile) = cls + pos[0];
    #                            other rows = conv bias + pos.
    # o_ref:   (1, T, Dp)  out   final token layout, one aligned store.
    o_ref[0] = (jnp.dot(x_ref[0], w_ref[...],
                        preferred_element_type=jnp.float32)
                + add_ref[...]).astype(o_ref.dtype)


def _make_tiled_k_kernel(tk):
    # Fallback for very large K: contraction split over grid axis 2; the
    # weight stays fully resident in VMEM and is sliced in-kernel, so it is
    # still only DMA'd from HBM once for the whole grid.
    # TODO(synk): when o_ref.dtype is f32, accumulate directly into the
    #   resident output block and drop this scratch (saves T*Dp*4 VMEM).
    def _kernel(x_ref, w_ref, add_ref, o_ref, acc_ref):
        k = pl.program_id(2)

        @pl.when(k == 0)
        def _init():
            acc_ref[...] = jnp.zeros_like(acc_ref)

        start = pl.multiple_of(k * tk, tk)
        acc_ref[...] += jnp.dot(x_ref[0], w_ref[pl.ds(start, tk), :],
                                preferred_element_type=jnp.float32)

        @pl.when(k == pl.num_programs(2) - 1)
        def _finalize():
            # Single aligned full-tile store (no sublane-offset epilogue).
            o_ref[0] = (acc_ref[...] + add_ref[...]).astype(o_ref.dtype)

    return _kernel


# ---------------------------------------------------------------------------
# Sizing helpers
# ---------------------------------------------------------------------------
def _vmem_limit_bytes():
    """~3/4 of physical VMEM: ≈96 MiB on v5e/v6e (128 MiB), ≈48 MiB on v7x."""
    phys = 64 * 1024 * 1024
    try:
        phys = int(getattr(pltpu.get_tpu_info(), "vmem_capacity_bytes", phys))
    except Exception:
        pass
    limit = phys * 3 // 4
    return int(max(32 * 1024 * 1024, min(limit, 100 * 1024 * 1024)))


def _pick_token_tile(n_tok, max_tile=256):
    """Full token range when small; else a multiple-of-8 tile (v7x: gives a
    second parallel axis for its 2 TensorCores and caps resident footprint)."""
    return n_tok if n_tok <= max_tile else max_tile


def _pick_k_tile(K, tok_tile, D_pad, out_itemsize, vmem_budget):
    """Full K whenever the resident set fits VMEM; else a 256/128-multiple
    divisor of K (MXU-friendly on v6e/v7x and v5e respectively)."""
    def footprint(tk):
        x_tile = tok_tile * tk * 2 * 2              # bf16 x-tile, double-buffered
        w_res = K * D_pad * 2 * 2                   # bf16 weight (resident)
        add_t = tok_tile * D_pad * 4 * 2            # f32 additive tensor
        out_t = tok_tile * D_pad * out_itemsize * 2
        acc = 0 if tk == K else tok_tile * D_pad * 4
        return x_tile + w_res + add_t + out_t + acc

    if footprint(K) <= vmem_budget:
        return K
    for cand in (1024, 768, 512, 384, 256, 128):
        if cand < K and K % cand == 0 and footprint(cand) <= vmem_budget:
            return cand
    return K


# ---------------------------------------------------------------------------
# Forward pass
# ---------------------------------------------------------------------------
def patch_embedding(x, conv_w, conv_b, cls_token, pos_embed, *, patch_size,
                    compute_dtype=jnp.bfloat16, out_dtype=None,
                    max_token_tile=256):
    """x: (B, C, H, W) NCHW; conv_w: (D, C, P, P); conv_b: (D,);
    cls_token: (1, 1, D); pos_embed: (1, 1+N, D).  Returns (B, 1+N, D).

    compute_dtype=bf16 is a deliberate numerics option vs. the f32 PyTorch
    conv; pass jnp.float32 for bit-closer results."""
    B, C, H, W = x.shape
    P = patch_size
    D = conv_w.shape[0]
    Hp, Wp = H // P, W // P
    N = Hp * Wp
    K = C * P * P
    n_tok = 1 + N

    out_dtype = x.dtype if out_dtype is None else out_dtype
    D_pad = ((D + 127) // 128) * 128      # lane-dense output stores

    # Patchify fused with the bf16 cast (single HBM pass emitted by XLA),
    # feature order (c, ph, pw) == conv.flatten(2).transpose(1, 2).  A leading
    # all-zero token row is prepended so the kernel's GEMM row 0 is exactly
    # zero and one aligned store covers cls + patch rows.
    # TODO(synk): in-kernel patchify via strided DMA (see header).
    xp = (x.reshape(B, C, Hp, P, Wp, P)
            .transpose(0, 2, 4, 1, 3, 5)
            .astype(compute_dtype)
            .reshape(B, N, K))
    xp = jnp.pad(xp, ((0, 0), (1, 0), (0, 0)))                 # (B, 1+N, K)

    # Conv weight as (K, D_pad) bf16 for the MXU (zero-padded lanes).
    wk = conv_w.reshape(D, K).T.astype(compute_dtype)           # (K, D)
    if D_pad != D:
        wk = jnp.pad(wk, ((0, 0), (0, D_pad - D)))

    # Fold cls token, conv bias and positional embedding into one f32 additive
    # tensor: row 0 is the complete cls output row, rows 1..N are bias + pos.
    add = jnp.concatenate(
        [(cls_token[0] + pos_embed[0, :1, :]).astype(jnp.float32),
         (conv_b[None, :] + pos_embed[0, 1:, :]).astype(jnp.float32)],
        axis=0)                                                  # (1+N, D)
    if D_pad != D:
        add = jnp.pad(add, ((0, 0), (0, D_pad - D)))

    # --- tiling decisions -------------------------------------------------
    vmem_limit = _vmem_limit_bytes()
    vmem_budget = int(vmem_limit * 0.7)
    tok_tile = _pick_token_tile(n_tok, max_token_tile)
    t_tiles = pl.cdiv(n_tok, tok_tile)
    odt = jnp.dtype(out_dtype).itemsize
    tk = _pick_k_tile(K, tok_tile, D_pad, odt, vmem_budget)
    assert K % tk == 0, f"K tile {tk} must divide K={K}"
    kt = K // tk

    cdt = jnp.dtype(compute_dtype).itemsize
    cost = pl.CostEstimate(
        flops=2 * B * n_tok * K * D_pad,
        transcendentals=0,
        bytes_accessed=(B * n_tok * K * cdt          # activations, streamed once
                        + K * D_pad * cdt            # weight, fetched once
                        + t_tiles * n_tok * D_pad * 4  # additive tensor
                        + B * n_tok * D_pad * odt),  # output writeback
    )

    if kt == 1:
        grid = (t_tiles, B)
        in_specs = [
            pl.BlockSpec((1, tok_tile, K), lambda t, b: (b, t, 0)),
            pl.BlockSpec((K, D_pad), lambda t, b: (0, 0)),       # resident
            pl.BlockSpec((tok_tile, D_pad), lambda t, b: (t, 0)),
        ]
        out_specs = pl.BlockSpec((1, tok_tile, D_pad), lambda t, b: (b, t, 0))
        scratch = []
        kernel = _kernel_full_k
        dims = ("parallel", "parallel")
    else:
        grid = (t_tiles, B, kt)
        in_specs = [
            pl.BlockSpec((1, tok_tile, tk), lambda t, b, k: (b, t, k)),
            pl.BlockSpec((K, D_pad), lambda t, b, k: (0, 0)),    # resident
            pl.BlockSpec((tok_tile, D_pad), lambda t, b, k: (t, 0)),
        ]
        out_specs = pl.BlockSpec((1, tok_tile, D_pad),
                                 lambda t, b, k: (b, t, 0))
        scratch = [pltpu.VMEM((tok_tile, D_pad), jnp.float32)]
        kernel = _make_tiled_k_kernel(tk)
        dims = ("parallel", "parallel", "arbitrary")

    out = pl.pallas_call(
        kernel,
        out_shape=jax.ShapeDtypeStruct((B, n_tok, D_pad), out_dtype),
        grid_spec=pltpu.PrefetchScalarGridSpec(
            num_scalar_prefetch=0,
            grid=grid,
            in_specs=in_specs,
            out_specs=out_specs,
            scratch_shapes=scratch,
        ),
        compiler_params=pltpu.CompilerParams(
            dimension_semantics=dims,
            vmem_limit_bytes=vmem_limit,
        ),
        cost_estimate=cost,
    )(xp, wk, add)

    if D_pad != D:
        out = out[:, :, :D]
    return out


if __name__ == "__main__":
    # Module hyperparameters (small, consistent with the PyTorch module).
    image_size = 16
    patch_size = 4
    in_channels = 4
    embed_dim = 32
    batch = 2

    n_patches = (image_size // patch_size) ** 2

    key = jax.random.PRNGKey(0)
    k_x, k_w, k_b, k_cls, k_pos = jax.random.split(key, 5)

    x = jax.random.normal(k_x, (batch, in_channels, image_size, image_size),
                          dtype=jnp.float32)
    conv_w = jax.random.normal(
        k_w, (embed_dim, in_channels, patch_size, patch_size),
        dtype=jnp.float32) * 0.02
    conv_b = jax.random.normal(k_b, (embed_dim,), dtype=jnp.float32) * 0.02
    cls_token = jax.random.normal(k_cls, (1, 1, embed_dim), dtype=jnp.float32)
    pos_embed = jax.random.normal(k_pos, (1, 1 + n_patches, embed_dim),
                                  dtype=jnp.float32)

    fwd = jax.jit(patch_embedding, static_argnames=("patch_size",))
    out = fwd(x, conv_w, conv_b, cls_token, pos_embed, patch_size=patch_size)
    out = jax.block_until_ready(out)

    # Sanity check against a plain-JAX reference of the PyTorch forward.
    conv_ref = jax.lax.conv_general_dilated(
        x, conv_w, window_strides=(patch_size, patch_size), padding="VALID",
        dimension_numbers=("NCHW", "OIHW", "NCHW")) + conv_b[None, :, None, None]
    tokens_ref = conv_ref.reshape(batch, embed_dim, -1).transpose(0, 2, 1)
    cls_ref = jnp.broadcast_to(cls_token, (batch, 1, embed_dim))
    ref = jnp.concatenate([cls_ref, tokens_ref], axis=1) + pos_embed

    assert out.shape == (batch, 1 + n_patches, embed_dim)
    # bf16 matmul path -> looser tolerance than a pure-f32 conv (expected).
    assert jnp.allclose(out, ref, atol=2e-2, rtol=2e-2)

    print("KERNEL_OK")
</pallas_src>

<mosaic_0001>
module attributes {stable_mosaic.version = 11 : i64} {
  func.func @_kernel_full_k(%arg0: i32, %arg1: i32, %arg2: memref<1x17x64xbf16, #tpu.memory_space<vmem>>, %arg3: memref<64x128xbf16, #tpu.memory_space<vmem>>, %arg4: memref<17x128xf32, #tpu.memory_space<vmem>>, %arg5: memref<1x17x128xf32, #tpu.memory_space<vmem>>) attributes {dimension_semantics = [#tpu.dimension_semantics<parallel>, #tpu.dimension_semantics<parallel>], iteration_bounds = array<i64: 1, 2>, scalar_prefetch = 0 : i64, scratch_operands = 0 : i64, tpu.core_type = #tpu.core_type<tc>, window_params = [{transform_indices = @transform_0, window_bounds = array<i64: 1, 17, 64>}, {pipeline_mode = #tpu.pipeline_mode<synchronous>, transform_indices = @transform_1, window_bounds = array<i64: 64, 128>}, {transform_indices = @transform_2, window_bounds = array<i64: 17, 128>}, {transform_indices = @transform_3, window_bounds = array<i64: 1, 17, 128>}]} {
    %c0 = arith.constant 0 : index
    %c0_0 = arith.constant 0 : index
    %c0_1 = arith.constant 0 : index
    %0 = vector.load %arg2[%c0, %c0_0, %c0_1] : memref<1x17x64xbf16, #tpu.memory_space<vmem>>, vector<1x17x64xbf16>
    %1 = vector.shape_cast %0 : vector<1x17x64xbf16> to vector<17x64xbf16>
    %c0_2 = arith.constant 0 : index
    %c0_3 = arith.constant 0 : index
    %2 = vector.load %arg3[%c0_2, %c0_3] : memref<64x128xbf16, #tpu.memory_space<vmem>>, vector<64x128xbf16>
    %cst = arith.constant dense<0.000000e+00> : vector<17x128xf32>
    %3 = tpu.matmul %1, %2, %cst {dimension_numbers = #tpu.dot_dimension_numbers<[1], [0], [0], [1], [0, 0, 1, 1], [], []>} : vector<17x64xbf16>, vector<64x128xbf16>, vector<17x128xf32> -> vector<17x128xf32>
    %c0_4 = arith.constant 0 : index
    %c0_5 = arith.constant 0 : index
    %4 = vector.load %arg4[%c0_4, %c0_5] : memref<17x128xf32, #tpu.memory_space<vmem>>, vector<17x128xf32>
    %5 = arith.addf %3, %4 : vector<17x128xf32>
    %c0_6 = arith.constant 0 : index
    %c0_7 = arith.constant 0 : index
    %c0_8 = arith.constant 0 : index
    %6 = vector.load %arg5[%c0_6, %c0_7, %c0_8] : memref<1x17x128xf32, #tpu.memory_space<vmem>>, vector<1x17x128xf32>
    %7 = vector.shape_cast %6 : vector<1x17x128xf32> to vector<17x128xf32>
    %8 = vector.shape_cast %5 : vector<17x128xf32> to vector<1x17x128xf32>
    tpu.vector_store %arg5[%c0_6, %c0_7, %c0_8], %8 {strides = array<i32>} : memref<1x17x128xf32, #tpu.memory_space<vmem>>, vector<1x17x128xf32>,
    return
  }
  func.func @transform_0(%arg0: i32, %arg1: i32) -> (i32, i32, i32) {
    %c0_i32 = arith.constant 0 : i32
    %c0_i32_0 = arith.constant 0 : i32
    return %arg1, %arg0, %c0_i32 : i32, i32, i32
  }
  func.func @transform_1(%arg0: i32, %arg1: i32) -> (i32, i32) {
    %c0_i32 = arith.constant 0 : i32
    %c0_i32_0 = arith.constant 0 : i32
    %c0_i32_1 = arith.constant 0 : i32
    return %c0_i32, %c0_i32_0 : i32, i32
  }
  func.func @transform_2(%arg0: i32, %arg1: i32) -> (i32, i32) {
    %c0_i32 = arith.constant 0 : i32
    %c0_i32_0 = arith.constant 0 : i32
    return %arg0, %c0_i32 : i32, i32
  }
  func.func @transform_3(%arg0: i32, %arg1: i32) -> (i32, i32, i32) {
    %c0_i32 = arith.constant 0 : i32
    %c0_i32_0 = arith.constant 0 : i32
    return %arg1, %arg0, %c0_i32 : i32, i32, i32
  }
}

</mosaic_0001>

<bundles_post_ra>
// kernel: patch_embedding.1
= control target key start
LH: loop header
LB: loop body
LE: loop exit
PB: predicated region body
PF: predicated region fallthrough
CT: control target
= control target key end

     0   :  { %s551_s12 = smov 0   ;;  %s553_s13 = smov 0   ;;  %s605_s0 = inlined_call_operand.vmem [shape: bf16[2,17,64], index: 0, kind: input, shape index: {}]   ;;  %s606_s1 = inlined_call_operand.vmem [shape: bf16[64,128], index: 1, kind: input, shape index: {}]   ;;  %s607_s2 = inlined_call_operand.vmem [shape: f32[17,128], index: 2, kind: input, shape index: {}]   ;;  %s608_s3 = inlined_call_operand.vmem [shape: f32[2,17,128], index: 3, kind: output, shape index: {}]  }
   0x1   :  { %s555_s14 = smov 0  }
   0x2 LB: > { %s22_s15 = sadd.s32 1, %s525_s13  ;;  %p444_p0 = scmp.ge.s32.totalorder %s529_s14, 1  ;;  %s529_s14 = sphi %s555_s14, %s13_s14   ;;  %s525_s13 = sphi %s553_s13, %s610_s13   ;;  %s521_s12 = sphi %s551_s12, %s609_s12  }
   0x3   : > { %p23_p1 = scmp.ge.s32.totalorder %s22_s15, 2  ;;  %p169_p2 = scmp.lt.s32.totalorder %s529_s14, 3 }
   0x5   : > { %s612_s15 = smov (%p23_p1, %s22_s15), 0  ;;  %p170_p3 = pnand %p444_p0, %p169_p2 }
   0x6   : > { %v501_v0 = vld [vmem:[%s606_s1] sm:$0xff] (!%p170_p3)   ;;  %p207_p4 = scmp.lt.s32.totalorder (!%p170_p3), %s521_s12, 1  ;;  %v502_v1 = vld [vmem:[%s606_s1 + $0x8] sm:$0xff] (!%p170_p3)   ;;  %v503_v2 = vld [vmem:[%s606_s1 + $0x10] sm:$0xff] (!%p170_p3)   ;;  %vm279_vm0 = vcmask (!%p170_p3), 523264  }
   0x7   : > { %173 = sbr.rel (%p170_p3) target bundleno = 241 (0xf1), region = 32  ;;  %463 = vmatprep.subr.bf16.mxu0 (!%p170_p3), %v501_v0  ;;  %v504_v3 = vld [vmem:[%s606_s1 + $0x18] sm:$0xff] (!%p170_p3)   ;;  %v246_v6 = vld [vmem:[%s607_s2 + $0x10] sm:$0x1] (!%p170_p3)  ;;  %v244_v7 = vld [vmem:[%s607_s2] sm:$0xff] (!%p170_p3) }
   0x8   : > { %464 = vmatpush3.bf16.msra.mxu0 (!%p170_p3), %v501_v0  ;;  %v245_v11 = vld [vmem:[%s607_s2 + $0x8] sm:$0xff] (!%p170_p3) }
   0x9   : > { %465 = vmatprep.subr.bf16.mxu0 (!%p170_p3), %v502_v1 }
   0xc   : > { %466 = vmatpush3.bf16.msra.mxu0 (!%p170_p3), %v502_v1 }
   0xd   : > { %467 = vmatprep.subr.bf16.mxu0 (!%p170_p3), %v503_v2 }
   0xe   : > { %s614_s12 = smov (!%p207_p4, %s521_s12), 1 }
   0xf   : > { %s475_s22 = smul.u32 12, %s614_s12 }
  0x10   : > { %468 = vmatpush3.bf16.msra.mxu0 %v503_v2  ;;  %s476_s28 = smul.u32 24, %s614_s12 }
  0x11   : > { %s214_s25 = scalar_lea.vmem %s605_s0, %s475_s22  ;;  %469 = vmatprep.subr.bf16.mxu0 %v504_v3 }
  0x12   : > { %v505_v4 = vld [vmem:[%s214_s25] sm:$0xff]   ;;  %v506_v5 = vld [vmem:[%s214_s25 + $0x8] ss:$0 sps:$4 sm:$0x11]   ;;  %s230_s8 = scalar_lea.vmem %s608_s3, %s476_s28 }
  0x13   : > { %471 = vmatprep.mubr.msk.bf16.mxu0 %vm279_vm0, %v505_v4 }
  0x14   : > { %470 = vmatpush3.bf16.msra.mxu0 %v504_v3 }
  0x17   : > { %472 = vmatmul.mubr.msk.bf16.vlgmr.msra.gmra.mrb[0].mxu0 %vm279_vm0, %v506_v5 }
  0xea   : > { %v473_v8 = vpop.f32.mrb[0].mxu0 }
  0xeb   : > { %v329_v9 = vadd.f32 %v473_v8, %v246_v6  ;;  %v320_v10 = vpop.f32.mrb[1].mxu0 }
  0xec   : > { %v321_v12 = vadd.f32 %v320_v10, %v244_v7  ;;  %v474_v13 = vpop.f32.mrb[2].mxu0 }
  0xed   : > { %336 = vst [vmem:[%s230_s8 + $0x10] sm:$0x1] %v329_v9  ;;  %v323_v14 = vpop.f32.mrb[3].mxu0 }
  0xee   : > { %334 = vst [vmem:[%s230_s8] sm:$0xff] %v321_v12  ;;  %v324_v15 = vadd.f32 %v323_v14, %v245_v11 }
  0xf0   : > { %335 = vst [vmem:[%s230_s8 + $0x8] sm:$0xff] %v324_v15 }
  0xf1 PF: > { %s13_s14 = sadd.s32 1, %s529_s14   ;;  %s609_s12 = smov %s525_s13 }
  0xf2   : > { %p10_p5 = scmp.ge.s32.totalorder %s13_s14, 4   ;;  %s610_s13 = smov %s612_s15 }
  0xf4   :  { %12 = sbr.rel (!%p10_p5) target bundleno = 2 (0x2), region = 65 }

</bundles_post_ra>
